<compile_context>
chip_gen: v5e
topology: v5e:2x2
jax: 0.10.0
libtpu: 0.0.40
codegen_flags: <defaults>
</compile_context>

<pallas_src>
import jax
import jax.numpy as jnp
from jax import lax
from jax.experimental import pallas as pl
from jax.experimental.pallas import tpu as pltpu


def _make_mlp_kernel(tile_cols, chunk):
    """Build a kernel over one (features, tile_cols) batch tile, processed in
    `chunk`-column sub-blocks so activation VMEM stays tiny for any tile_cols."""
    n_full = tile_cols // chunk
    tail = tile_cols - n_full * chunk

    def kernel(xT_ref, w1_ref, b1_ref, w2_ref, b2_ref, w3_ref, b3_ref, o_ref):
        # Hoist the (tiny) weights/biases out of the chunk loop.
        w1 = w1_ref[...]          # (hid, in)   compute dtype (bf16 or f32)
        w2 = w2_ref[...]          # (hid, hid)
        w3 = w3_ref[...]          # (out, hid)
        b1 = b1_ref[...]          # (hid, 1)    f32
        b2 = b2_ref[...]          # (hid, 1)    f32
        b3 = b3_ref[...]          # (out, 1)    f32

        def compute_chunk(start, size):
            x = xT_ref[:, pl.ds(start, size)].astype(w1.dtype)   # (in, size)
            h1 = jnp.dot(w1, x, preferred_element_type=jnp.float32)
            h1 = jnp.maximum(h1 + b1, 0.0)                       # f32 VPU
            h2 = jnp.dot(w2, h1.astype(w2.dtype),
                         preferred_element_type=jnp.float32)
            h2 = jnp.maximum(h2 + b2, 0.0)                       # f32 VPU
            out = jnp.dot(w3, h2.astype(w3.dtype),
                          preferred_element_type=jnp.float32)
            o_ref[:, pl.ds(start, size)] = (out + b3).astype(o_ref.dtype)

        if n_full > 0:
            def body(c, carry):
                start = pl.multiple_of(c * chunk, chunk)
                compute_chunk(start, chunk)
                return carry
            lax.fori_loop(0, n_full, body, 0, unroll=2)
        if tail:  # static tail (only when the tile is the full, ragged batch)
            compute_chunk(n_full * chunk, tail)

    return kernel


def option_pricing_forward_fm(x_fm, params, *, tile_b=32768, chunk=512,
                              compute_dtype=jnp.bfloat16):
    """Feature-major forward: x_fm is (input_dim, B) f32, returns (output_dim, B) f32.

    params: dict of w1,b1,w2,b2,w3,b3; weights in PyTorch (out_features, in_features)
    orientation, biases of shape (out_features,).
    """
    in_dim, B = x_fm.shape
    w1 = params["w1"].astype(compute_dtype)
    w2 = params["w2"].astype(compute_dtype)
    w3 = params["w3"].astype(compute_dtype)
    hid = w1.shape[0]
    out_dim = w3.shape[0]
    # Biases as f32 columns so they lane-broadcast against (features, chunk).
    b1c = params["b1"].astype(jnp.float32).reshape(hid, 1)
    b2c = params["b2"].astype(jnp.float32).reshape(hid, 1)
    b3c = params["b3"].astype(jnp.float32).reshape(out_dim, 1)

    # Lane-chunk width: multiple of 128.
    chunk = max(128, (chunk // 128) * 128)
    if B <= tile_b:
        # Single full-extent tile (allowed for arbitrary B); ragged tail columns
        # are handled by the static tail chunk inside the kernel.
        tile_b = B
    else:
        # Streamed tiles: multiple of `chunk` (hence of 128).  The last grid
        # block may be partial; Pallas masks its writeback.
        tile_b = max(chunk, (tile_b // chunk) * chunk)

    grid = (pl.cdiv(B, tile_b),)

    weight_bytes = sum(int(a.size) * a.dtype.itemsize
                       for a in (w1, b1c, w2, b2c, w3, b3c))
    cost = pl.CostEstimate(
        flops=2 * B * (in_dim * hid + hid * hid + hid * out_dim),
        transcendentals=0,
        bytes_accessed=B * (in_dim + out_dim) * 4 + weight_bytes,
    )

    # Weights/biases: full-array blocks with constant index_map -> loaded once,
    # VMEM-resident across all batch tiles.
    def resident(a):
        return pl.BlockSpec(a.shape, lambda i: (0, 0))

    kernel = _make_mlp_kernel(tile_b, chunk)

    out_fm = pl.pallas_call(
        kernel,
        out_shape=jax.ShapeDtypeStruct((out_dim, B), jnp.float32),
        grid=grid,
        in_specs=[
            pl.BlockSpec((in_dim, tile_b), lambda i: (0, i)),     # streamed x
            resident(w1), resident(b1c),
            resident(w2), resident(b2c),
            resident(w3), resident(b3c),
        ],
        out_specs=pl.BlockSpec((out_dim, tile_b), lambda i: (0, i)),
        compiler_params=pltpu.CompilerParams(
            dimension_semantics=("parallel",),
            vmem_limit_bytes=48 * 1024 * 1024,   # well under v7x's 64 MiB/TC
        ),
        cost_estimate=cost,
    )(x_fm, w1, b1c, w2, b2c, w3, b3c)

    return out_fm


def option_pricing_forward(x, params, **kwargs):
    """PyTorch-layout convenience wrapper: x is (B, input_dim), returns (B, output_dim).

    Adds two transpose passes; prefer option_pricing_forward_fm when the
    surrounding pipeline can stay feature-major.
    """
    return option_pricing_forward_fm(x.T, params, **kwargs).T


def init_params(key, input_dim=6, output_dim=2, hidden_dim=64):
    """Deterministic init mimicking PyTorch's default Linear init
    (uniform in +/- 1/sqrt(fan_in)); weights stored as (out, in)."""
    ks = jax.random.split(key, 6)

    def lin(kw, kb, fan_in, fan_out):
        bound = 1.0 / jnp.sqrt(fan_in)
        w = jax.random.uniform(kw, (fan_out, fan_in), jnp.float32, -bound, bound)
        b = jax.random.uniform(kb, (fan_out,), jnp.float32, -bound, bound)
        return w, b

    w1, b1 = lin(ks[0], ks[1], input_dim, hidden_dim)
    w2, b2 = lin(ks[2], ks[3], hidden_dim, hidden_dim)
    w3, b3 = lin(ks[4], ks[5], hidden_dim, output_dim)
    return {"w1": w1, "b1": b1, "w2": w2, "b2": b2, "w3": w3, "b3": b3}


def _reference(x, params):
    h = jnp.maximum(x @ params["w1"].T + params["b1"], 0.0)
    h = jnp.maximum(h @ params["w2"].T + params["b2"], 0.0)
    return h @ params["w3"].T + params["b3"]


if __name__ == "__main__":
    key = jax.random.PRNGKey(0)
    k_param, k_x, k_x2 = jax.random.split(key, 3)

    input_dim, output_dim, hidden_dim = 6, 2, 64
    params = init_params(k_param, input_dim, output_dim, hidden_dim)

    # --- Test 1: tiny batch (single full-extent tile), f32 and bf16 paths. ---
    batch = 8
    x = jax.random.normal(k_x, (batch, input_dim), jnp.float32)
    ref = _reference(x, params)

    out_f32 = option_pricing_forward(x, params, compute_dtype=jnp.float32)
    out_f32 = jax.block_until_ready(out_f32)
    assert out_f32.shape == (batch, output_dim)
    assert jnp.allclose(out_f32, ref, atol=1e-4, rtol=1e-4)

    out_bf16 = option_pricing_forward_fm(x.T, params).T   # default bf16 matmuls
    out_bf16 = jax.block_until_ready(out_bf16)
    assert out_bf16.shape == (batch, output_dim)
    assert jnp.allclose(out_bf16, ref, atol=5e-2, rtol=5e-2)

    # --- Test 2: ragged batch > tile_b (multi-tile grid, partial last block,
    #             inner chunk loop exercised). ---
    batch2 = 333
    x2 = jax.random.normal(k_x2, (batch2, input_dim), jnp.float32)
    ref2 = _reference(x2, params)
    out2 = option_pricing_forward(x2, params, tile_b=256, chunk=128,
                                  compute_dtype=jnp.float32)
    out2 = jax.block_until_ready(out2)
    assert out2.shape == (batch2, output_dim)
    assert jnp.allclose(out2, ref2, atol=1e-4, rtol=1e-4)

    print("KERNEL_OK")
</pallas_src>

<mosaic_0001>
module attributes {stable_mosaic.version = 11 : i64} {
  func.func @kernel(%arg0: i32, %arg1: memref<6x8xf32, #tpu.memory_space<vmem>>, %arg2: memref<64x6xf32, #tpu.memory_space<vmem>>, %arg3: memref<64x1xf32, #tpu.memory_space<vmem>>, %arg4: memref<64x64xf32, #tpu.memory_space<vmem>>, %arg5: memref<64x1xf32, #tpu.memory_space<vmem>>, %arg6: memref<2x64xf32, #tpu.memory_space<vmem>>, %arg7: memref<2x1xf32, #tpu.memory_space<vmem>>, %arg8: memref<2x8xf32, #tpu.memory_space<vmem>>) attributes {dimension_semantics = [#tpu.dimension_semantics<parallel>], iteration_bounds = array<i64: 1>, scalar_prefetch = 0 : i64, scratch_operands = 0 : i64, tpu.core_type = #tpu.core_type<tc>, window_params = [{transform_indices = @transform_0, window_bounds = array<i64: 6, 8>}, {pipeline_mode = #tpu.pipeline_mode<synchronous>, transform_indices = @transform_1, window_bounds = array<i64: 64, 6>}, {pipeline_mode = #tpu.pipeline_mode<synchronous>, transform_indices = @transform_2, window_bounds = array<i64: 64, 1>}, {pipeline_mode = #tpu.pipeline_mode<synchronous>, transform_indices = @transform_3, window_bounds = array<i64: 64, 64>}, {pipeline_mode = #tpu.pipeline_mode<synchronous>, transform_indices = @transform_4, window_bounds = array<i64: 64, 1>}, {pipeline_mode = #tpu.pipeline_mode<synchronous>, transform_indices = @transform_5, window_bounds = array<i64: 2, 64>}, {pipeline_mode = #tpu.pipeline_mode<synchronous>, transform_indices = @transform_6, window_bounds = array<i64: 2, 1>}, {transform_indices = @transform_7, window_bounds = array<i64: 2, 8>}]} {
    %c0 = arith.constant 0 : index
    %c0_0 = arith.constant 0 : index
    %0 = vector.load %arg2[%c0, %c0_0] : memref<64x6xf32, #tpu.memory_space<vmem>>, vector<64x6xf32>
    %c0_1 = arith.constant 0 : index
    %c0_2 = arith.constant 0 : index
    %1 = vector.load %arg4[%c0_1, %c0_2] : memref<64x64xf32, #tpu.memory_space<vmem>>, vector<64x64xf32>
    %c0_3 = arith.constant 0 : index
    %c0_4 = arith.constant 0 : index
    %2 = vector.load %arg6[%c0_3, %c0_4] : memref<2x64xf32, #tpu.memory_space<vmem>>, vector<2x64xf32>
    %c0_5 = arith.constant 0 : index
    %c0_6 = arith.constant 0 : index
    %3 = vector.load %arg3[%c0_5, %c0_6] : memref<64x1xf32, #tpu.memory_space<vmem>>, vector<64x1xf32>
    %c0_7 = arith.constant 0 : index
    %c0_8 = arith.constant 0 : index
    %4 = vector.load %arg5[%c0_7, %c0_8] : memref<64x1xf32, #tpu.memory_space<vmem>>, vector<64x1xf32>
    %c0_9 = arith.constant 0 : index
    %c0_10 = arith.constant 0 : index
    %5 = vector.load %arg7[%c0_9, %c0_10] : memref<2x1xf32, #tpu.memory_space<vmem>>, vector<2x1xf32>
    %c0_11 = arith.constant 0 : index
    %c0_12 = arith.constant 0 : index
    %6 = vector.load %arg1[%c0_11, %c0_12] : memref<6x8xf32, #tpu.memory_space<vmem>>, vector<6x8xf32>
    %cst = arith.constant dense<0.000000e+00> : vector<64x8xf32>
    %7 = tpu.matmul %0, %6, %cst {dimension_numbers = #tpu.dot_dimension_numbers<[1], [0], [0], [1], [0, 0, 1, 1], [], []>} : vector<64x6xf32>, vector<6x8xf32>, vector<64x8xf32> -> vector<64x8xf32>
    %8 = vector.broadcast %3 : vector<64x1xf32> to vector<64x8xf32>
    %9 = arith.addf %7, %8 : vector<64x8xf32>
    %cst_13 = arith.constant 0.000000e+00 : f32
    %10 = vector.broadcast %cst_13 : f32 to vector<64x8xf32>
    %11 = arith.maximumf %9, %10 : vector<64x8xf32>
    %cst_14 = arith.constant dense<0.000000e+00> : vector<64x8xf32>
    %12 = tpu.matmul %1, %11, %cst_14 {dimension_numbers = #tpu.dot_dimension_numbers<[1], [0], [0], [1], [0, 0, 1, 1], [], []>} : vector<64x64xf32>, vector<64x8xf32>, vector<64x8xf32> -> vector<64x8xf32>
    %13 = vector.broadcast %4 : vector<64x1xf32> to vector<64x8xf32>
    %14 = arith.addf %12, %13 : vector<64x8xf32>
    %cst_15 = arith.constant 0.000000e+00 : f32
    %15 = vector.broadcast %cst_15 : f32 to vector<64x8xf32>
    %16 = arith.maximumf %14, %15 : vector<64x8xf32>
    %cst_16 = arith.constant dense<0.000000e+00> : vector<2x8xf32>
    %17 = tpu.matmul %2, %16, %cst_16 {dimension_numbers = #tpu.dot_dimension_numbers<[1], [0], [0], [1], [0, 0, 1, 1], [], []>} : vector<2x64xf32>, vector<64x8xf32>, vector<2x8xf32> -> vector<2x8xf32>
    %18 = vector.broadcast %5 : vector<2x1xf32> to vector<2x8xf32>
    %19 = arith.addf %17, %18 : vector<2x8xf32>
    %c0_17 = arith.constant 0 : index
    %c0_18 = arith.constant 0 : index
    %20 = vector.load %arg8[%c0_17, %c0_18] : memref<2x8xf32, #tpu.memory_space<vmem>>, vector<2x8xf32>
    tpu.vector_store %arg8[%c0_17, %c0_18], %19 {strides = array<i32>} : memref<2x8xf32, #tpu.memory_space<vmem>>, vector<2x8xf32>,
    return
  }
  func.func @transform_0(%arg0: i32) -> (i32, i32) {
    %c0_i32 = arith.constant 0 : i32
    %c0_i32_0 = arith.constant 0 : i32
    return %c0_i32, %arg0 : i32, i32
  }
  func.func @transform_1(%arg0: i32) -> (i32, i32) {
    %c0_i32 = arith.constant 0 : i32
    %c0_i32_0 = arith.constant 0 : i32
    %c0_i32_1 = arith.constant 0 : i32
    return %c0_i32, %c0_i32_0 : i32, i32
  }
  func.func @transform_2(%arg0: i32) -> (i32, i32) {
    %c0_i32 = arith.constant 0 : i32
    %c0_i32_0 = arith.constant 0 : i32
    %c0_i32_1 = arith.constant 0 : i32
    return %c0_i32, %c0_i32_0 : i32, i32
  }
  func.func @transform_3(%arg0: i32) -> (i32, i32) {
    %c0_i32 = arith.constant 0 : i32
    %c0_i32_0 = arith.constant 0 : i32
    %c0_i32_1 = arith.constant 0 : i32
    return %c0_i32, %c0_i32_0 : i32, i32
  }
  func.func @transform_4(%arg0: i32) -> (i32, i32) {
    %c0_i32 = arith.constant 0 : i32
    %c0_i32_0 = arith.constant 0 : i32
    %c0_i32_1 = arith.constant 0 : i32
    return %c0_i32, %c0_i32_0 : i32, i32
  }
  func.func @transform_5(%arg0: i32) -> (i32, i32) {
    %c0_i32 = arith.constant 0 : i32
    %c0_i32_0 = arith.constant 0 : i32
    %c0_i32_1 = arith.constant 0 : i32
    return %c0_i32, %c0_i32_0 : i32, i32
  }
  func.func @transform_6(%arg0: i32) -> (i32, i32) {
    %c0_i32 = arith.constant 0 : i32
    %c0_i32_0 = arith.constant 0 : i32
    %c0_i32_1 = arith.constant 0 : i32
    return %c0_i32, %c0_i32_0 : i32, i32
  }
  func.func @transform_7(%arg0: i32) -> (i32, i32) {
    %c0_i32 = arith.constant 0 : i32
    %c0_i32_0 = arith.constant 0 : i32
    return %c0_i32, %arg0 : i32, i32
  }
}

</mosaic_0001>

<bundles_post_ra>
// kernel: tpu_custom_call.1
= control target key start
LH: loop header
LB: loop body
LE: loop exit
PB: predicated region body
PF: predicated region fallthrough
CT: control target
= control target key end

     0   :  { %vm127_vm0 = vcmask 1045504   ;;  %v398_v3 = vmov 0   ;;  %vm102_vm1 = vcmask 48128   ;;  %s565_s0 = inlined_call_operand.vmem [shape: f32[6,8], index: 0, kind: input, shape index: {}]   ;;  %s566_s1 = inlined_call_operand.vmem [shape: f32[64,6], index: 1, kind: input, shape index: {}]   ;;  %s567_s2 = inlined_call_operand.vmem [shape: f32[64,1], index: 2, kind: input, shape index: {}]   ;;  %s568_s3 = inlined_call_operand.vmem [shape: f32[64,64], index: 3, kind: input, shape index: {}]   ;;  %s569_s4 = inlined_call_operand.vmem [shape: f32[64,1], index: 4, kind: input, shape index: {}]   ;;  %s570_s5 = inlined_call_operand.vmem [shape: f32[2,64], index: 5, kind: input, shape index: {}]   ;;  %s571_s6 = inlined_call_operand.vmem [shape: f32[2,1], index: 6, kind: input, shape index: {}]   ;;  %s572_s7 = inlined_call_operand.hbm [shape: f32[2,8], index: 7, kind: output, shape index: {}]  }
   0x1   :  { %v61_v0 = vld [vmem:[%s565_s0] sm:$0x3f]  ;;  %v49_v1 = vld [vmem:[%s567_s2 + $0x28] sm:$0xff]  ;;  %370 = vset.pattern.permute.xlu1 %v398_v3  ;;  %v51_v4 = vld [vmem:[%s567_s2 + $0x38] sm:$0xff]  ;;  %369 = vset.pattern.permute.xlu0 %v398_v3 }
   0x2   :  { %v27_v2 = vld [vmem:[%s566_s1] sm:$0xff]  ;;  %340 = vmatpush.msk.msra.mxu0 %vm127_vm0, %v61_v0  ;;  %89 = vperm.xlu1 %370, %v49_v1   ;;  %v33_v5 = vld [vmem:[%s566_s1 + $0x30] sm:$0xff] }
   0x3   :  { %341 = vmatmul.msk.f32.vlgmr.msra.gmra.mxu0 %vm102_vm1, %v27_v2  ;;  %99 = vperm.xlu0 %369, %v51_v4  }
   0x4   :  { %358 = vmatpush.msk.msra.mxu2 %vm127_vm0, %v61_v0  ;;  %371 = vset.pattern.permute.xlu2 %v398_v3 }
   0x5   :  { %347 = vmatmul.msk.f32.vlgmr.msra.gmra.mxu2 %vm102_vm1, %v33_v5 }
   0x6   :  { %12 = vsyncpa [#allocation3], 0  ;;  %v48_v6 = vld [vmem:[%s567_s2 + $0x20] sm:$0xff]  ;;  %v28_v7 = vld [vmem:[%s566_s1 + $0x8] sm:$0xff]  ;;  %vm220_vm2 = vcmask 523264   ;;  %s399_s16 = smov [#allocation2]  }
   0x7   :  { %v50_v8 = vld [vmem:[%s567_s2 + $0x30] sm:$0xff]  ;;  %v34_v9 = vld [vmem:[%s566_s1 + $0x38] sm:$0xff]  ;;  %v44_v11 = vld [vmem:[%s567_s2] sm:$0xff]  ;;  %s329_s17 = sshll.u32 %s399_s16, 4  ;;  %s331_s20 = sshll.u32 %s572_s7, 4  ;;  %vm322_vm3 = vcmask 58368   ;;  %s330_s17 = int_to_ptr.vmem [resolvable:$true] %s329_s17  ;;  %s332_s20 = int_to_ptr.hbm [resolvable:$true] %s331_s20 }
   0x8   :  { %v47_v10 = vld [vmem:[%s567_s2 + $0x18] sm:$0xff]  ;;  %v29_v12 = vld [vmem:[%s566_s1 + $0x10] sm:$0xff]  ;;  %v45_v13 = vld [vmem:[%s567_s2 + $0x8] sm:$0xff] }
   0x9   :  { %79 = vperm.xlu2 %371, %v47_v10   ;;  %v46_v14 = vld [vmem:[%s567_s2 + $0x10] sm:$0xff]  ;;  %v57_v15 = vld [vmem:[%s569_s4 + $0x28] sm:$0xff]  ;;  %v30_v16 = vld [vmem:[%s566_s1 + $0x18] sm:$0xff] }
   0xa   :  { %84 = vperm.xlu1 %370, %v48_v6   ;;  %v58_v17 = vld [vmem:[%s569_s4 + $0x30] sm:$0xff]  ;;  %v59_v18 = vld [vmem:[%s569_s4 + $0x38] sm:$0xff]  ;;  %v31_v20 = vld [vmem:[%s566_s1 + $0x20] sm:$0xff] }
   0xb   :  { %342 = vmatmul.msk.f32.gmra.mxu0 %vm102_vm1, %v28_v7  ;;  %94 = vperm.xlu0 %369, %v50_v8   ;;  %v54_v19 = vld [vmem:[%s569_s4 + $0x10] sm:$0xff]  ;;  %v55_v21 = vld [vmem:[%s569_s4 + $0x18] sm:$0xff]  ;;  %v56_v22 = vld [vmem:[%s569_s4 + $0x20] sm:$0xff] }
   0xc   :  { %v60_v23 = vld [vmem:[%s571_s6] sm:$0x3]  ;;  %v32_v24 = vld [vmem:[%s566_s1 + $0x28] sm:$0xff]  ;;  %v37_v63 = vld [vmem:[%s568_s3 + $0x10] sm:$0xff] }
   0xd   :  { %348 = vmatmul.msk.f32.gmra.mxu2 %vm102_vm1, %v34_v9  ;;  %v52_v25 = vld [vmem:[%s569_s4] sm:$0xff]  ;;  %v53_v26 = vld [vmem:[%s569_s4 + $0x8] sm:$0xff]  ;;  %v41_v0 = vld [vmem:[%s568_s3 + $0x30] sm:$0xff] }
   0xe   :  { %v35_v59 = vld [vmem:[%s568_s3] sm:$0xff]  ;;  %v36_v61 = vld [vmem:[%s568_s3 + $0x8] sm:$0xff]  ;;  %v38_v1 = vld [vmem:[%s568_s3 + $0x18] sm:$0xff] }
   0xf   :  { %v39_v60 = vld [vmem:[%s568_s3 + $0x20] sm:$0xff]  ;;  %v40_v62 = vld [vmem:[%s568_s3 + $0x28] sm:$0xff]  ;;  %v42_v2 = vld [vmem:[%s568_s3 + $0x38] sm:$0xff] }
  0x11   :  { %74 = vperm.xlu2 %371, %v46_v14  }
  0x12   :  { %64 = vperm.xlu1 %370, %v44_v11  }
  0x13   :  { %343 = vmatmul.msk.f32.gmra.mxu0 %vm102_vm1, %v29_v12  ;;  %69 = vperm.xlu0 %369, %v45_v13  }
  0x19   :  { %217 = vperm.xlu2 %371, %v59_v18  }
  0x1a   :  { %207 = vperm.xlu1 %370, %v57_v15  }
  0x1b   :  { %344 = vmatmul.msk.f32.gmra.mxu0 %vm102_vm1, %v30_v16  ;;  %212 = vperm.xlu0 %369, %v58_v17  }
  0x21   :  { %202 = vperm.xlu2 %371, %v56_v22  }
  0x22   :  { %192 = vperm.xlu1 %370, %v54_v19  }
  0x23   :  { %345 = vmatmul.msk.f32.gmra.mxu0 %vm102_vm1, %v31_v20  ;;  %197 = vperm.xlu0 %369, %v55_v21  }
  0x29   :  { %187 = vperm.xlu2 %371, %v53_v26  }
  0x2a   :  { %296 = vperm.xlu1 %370, %v60_v23  }
  0x2b   :  { %346 = vmatmul.msk.f32.gmra.mxu0 %vm102_vm1, %v32_v24  ;;  %182 = vperm.xlu0 %369, %v52_v25  }
  0x63   :  { %v80_v41 = vpop.permute.xlu2 %79 }
  0x6b   :  { %v75_v48 = vpop.permute.xlu2 %74 }
  0x73   :  { %v218_v7 = vpop.permute.xlu2 %217 }
  0x74   :  { %v90_v39 = vpop.permute.xlu1 %89 }
  0x75   :  { %v100_v28 = vpop.permute.xlu0 %99 }
  0x7b   :  { %v203_v12 = vpop.permute.xlu2 %202 }
  0x7c   :  { %v85_v42 = vpop.permute.xlu1 %84 }
  0x7d   :  { %v95_v31 = vpop.permute.xlu0 %94 }
  0x80   :  { %v148_v27 = vpop.f32.mrf.mxu0 }
  0x84   :  { %v65_v51 = vpop.permute.xlu1 %64 }
  0x85   :  { %v70_v52 = vpop.permute.xlu0 %69  ;;  %v149_v55 = vadd.f32 %v148_v27, %v65_v51  ;;  %v188_v27 = vpop.permute.xlu2 %187 }
  0x87   :  { %v172_v58 = vmax.f32 %v149_v55, 0.0 }
  0x88   :  { %v151_v29 = vpop.f32.mrf.mxu0  ;;  %v166_v30 = vpop.f32.mrf.mxu2 }
  0x89   :  { %v167_v32 = vadd.f32 %v166_v30, %v95_v31  ;;  %v152_v53 = vadd.f32 %v151_v29, %v70_v52 }
  0x8b   :  { %v178_v36 = vmax.f32 %v167_v32, 0.0  ;;  %v173_v57 = vmax.f32 %v152_v53, 0.0 }
  0x8c   :  { %v208_v11 = vpop.permute.xlu1 %207 }
  0x8d   :  { %v213_v8 = vpop.permute.xlu0 %212 }
  0x90   :  { %v154_v33 = vpop.f32.mrf.mxu0  ;;  %v169_v34 = vpop.f32.mrf.mxu2 }
  0x91   :  { %v170_v35 = vadd.f32 %v169_v34, %v100_v28  ;;  %v155_v49 = vadd.f32 %v154_v33, %v75_v48 }
  0x93   :  { %v179_v37 = vmax.f32 %v170_v35, 0.0  ;;  %v174_v56 = vmax.f32 %v155_v49, 0.0  ;;  %v43_v35 = vld [vmem:[%s570_s5] sm:$0x3] }
  0x94   :  { %v193_v24 = vpop.permute.xlu1 %192 }
  0x95   :  { %253 = vmatpush.msra.mxu1 %v179_v37  ;;  %359 = vmatpush.msra.mxu3 %v179_v37  ;;  %v198_v16 = vpop.permute.xlu0 %197 }
  0x97   :  { %254 = vmatpush.msra.mxu1 %v178_v36  ;;  %360 = vmatpush.msra.mxu3 %v178_v36 }
  0x98   :  { %v157_v38 = vpop.f32.mrf.mxu0 }
  0x99   :  { %v158_v46 = vadd.f32 %v157_v38, %v80_v41 }
  0x9b   :  { %v175_v54 = vmax.f32 %v158_v46, 0.0 }
  0x9c   :  { %v297_v36 = vpop.permute.xlu1 %296 }
  0x9d   :  { %v183_v30 = vpop.permute.xlu0 %182 }
  0xa0   :  { %v160_v40 = vpop.f32.mrf.mxu0 }
  0xa1   :  { %v161_v44 = vadd.f32 %v160_v40, %v85_v42 }
  0xa3   :  { %v176_v50 = vmax.f32 %v161_v44, 0.0 }
  0xa8   :  { %v163_v43 = vpop.f32.mrf.mxu0 }
  0xa9   :  { %v164_v45 = vadd.f32 %v163_v43, %v90_v39 }
  0xab   :  { %v177_v47 = vmax.f32 %v164_v45, 0.0 }
  0xad   :  { %255 = vmatpush.msra.mxu1 %v177_v47  ;;  %361 = vmatpush.msra.mxu3 %v177_v47 }
  0xaf   :  { %256 = vmatpush.msra.mxu1 %v176_v50  ;;  %362 = vmatpush.msra.mxu3 %v176_v50 }
  0xb1   :  { %257 = vmatpush.msra.mxu1 %v175_v54  ;;  %363 = vmatpush.msra.mxu3 %v175_v54 }
  0xb3   :  { %258 = vmatpush.msra.mxu1 %v174_v56  ;;  %364 = vmatpush.msra.mxu3 %v174_v56 }
  0xb5   :  { %259 = vmatpush.msra.mxu1 %v173_v57  ;;  %365 = vmatpush.msra.mxu3 %v173_v57 }
  0xb7   :  { %260 = vmatpush.msra.mxu1 %v172_v58  ;;  %366 = vmatpush.msra.mxu3 %v172_v58 }
  0xb8   :  { %349 = vmatmul.msk.f32.vlgmr.msra.gmra.mxu1 %vm220_vm2, %v35_v59  ;;  %353 = vmatmul.msk.f32.vlgmr.msra.gmra.mxu3 %vm220_vm2, %v39_v60 }
  0xc0   :  { %350 = vmatmul.msk.f32.gmra.mxu1 %vm220_vm2, %v36_v61  ;;  %354 = vmatmul.msk.f32.gmra.mxu3 %vm220_vm2, %v40_v62 }
  0xc8   :  { %351 = vmatmul.msk.f32.gmra.mxu1 %vm220_vm2, %v37_v63  ;;  %355 = vmatmul.msk.f32.gmra.mxu3 %vm220_vm2, %v41_v0 }
  0xd0   :  { %352 = vmatmul.msk.f32.gmra.mxu1 %vm220_vm2, %v38_v1  ;;  %356 = vmatmul.msk.f32.gmra.mxu3 %vm220_vm2, %v42_v2 }
 0x135   :  { %v262_v3 = vpop.f32.mrf.mxu1 }
 0x136   :  { %v263_v31 = vadd.f32 %v262_v3, %v183_v30 }
 0x138   :  { %v286_v34 = vmax.f32 %v263_v31, 0.0 }
 0x13b   :  { %v274_v4 = vpop.f32.mrf.mxu3 }
 0x13c   :  { %v275_v20 = vadd.f32 %v274_v4, %v203_v12 }
 0x13d   :  { %v265_v5 = vpop.f32.mrf.mxu1 }
 0x13e   :  { %v290_v25 = vmax.f32 %v275_v20, 0.0  ;;  %v266_v28 = vadd.f32 %v265_v5, %v188_v27 }
 0x140   :  { %v287_v33 = vmax.f32 %v266_v28, 0.0 }
 0x143   :  { %v277_v6 = vpop.f32.mrf.mxu3 }
 0x144   :  { %v278_v17 = vadd.f32 %v277_v6, %v208_v11 }
 0x145   :  { %v268_v10 = vpop.f32.mrf.mxu1 }
 0x146   :  { %v291_v22 = vmax.f32 %v278_v17, 0.0  ;;  %v269_v26 = vadd.f32 %v268_v10, %v193_v24 }
 0x148   :  { %v288_v32 = vmax.f32 %v269_v26, 0.0 }
 0x14b   :  { %v280_v9 = vpop.f32.mrf.mxu3 }
 0x14c   :  { %v281_v14 = vadd.f32 %v280_v9, %v213_v8 }
 0x14d   :  { %v271_v19 = vpop.f32.mrf.mxu1 }
 0x14e   :  { %v292_v21 = vmax.f32 %v281_v14, 0.0  ;;  %v272_v23 = vadd.f32 %v271_v19, %v198_v16 }
 0x150   :  { %v289_v29 = vmax.f32 %v272_v23, 0.0 }
 0x153   :  { %v283_v13 = vpop.f32.mrf.mxu3 }
 0x154   :  { %v284_v15 = vadd.f32 %v283_v13, %v218_v7 }
 0x156   :  { %v293_v18 = vmax.f32 %v284_v15, 0.0 }
 0x158   :  { %310 = vmatpush.msrb.mxu2 %v293_v18 }
 0x15a   :  { %311 = vmatpush.msrb.mxu2 %v292_v21 }
 0x15c   :  { %312 = vmatpush.msrb.mxu2 %v291_v22 }
 0x15e   :  { %313 = vmatpush.msrb.mxu2 %v290_v25 }
 0x160   :  { %314 = vmatpush.msrb.mxu2 %v289_v29 }
 0x162   :  { %315 = vmatpush.msrb.mxu2 %v288_v32 }
 0x164   :  { %316 = vmatpush.msrb.mxu2 %v287_v33 }
 0x166   :  { %317 = vmatpush.msrb.mxu2 %v286_v34 }
 0x167   :  { %357 = vmatmul.msk.f32.vlgmr.msrb.gmra.mxu2 %vm220_vm2, %v43_v35 }
 0x1ea   :  { %v319_v37 = vpop.f32.mrf.mxu2 }
 0x1eb   :  { %v320_v38 = vadd.f32 %v319_v37, %v297_v36 }
 0x1ed   :  { %323 = vst.msk [vmem:[#allocation2] sm:$0x3] %vm322_vm3, %v320_v38 }
 0x1ee   :  { %334 = dma.vmem_to_hbm [thread:$0]  %s330_s17, 32, %s332_s20, [#allocation3]  }
 0x1ef   :  { %396 = dma.done.wait [#allocation3], 32  }
 0x1f0   :  { %397 = vsyncadd [#allocation3], 4294967264 }
 0x1f1   :  { %339 = vsyncpa [#allocation3], 1 }

</bundles_post_ra>
